<compile_context>
chip_gen: v5e
topology: v5e:2x2
jax: 0.10.0
libtpu: 0.0.40
codegen_flags: <defaults>
</compile_context>

<pallas_src>
import jax
import jax.numpy as jnp
from jax.experimental import pallas as pl
from jax.experimental.pallas import tpu as pltpu


def _round_up(x, m):
    return ((x + m - 1) // m) * m


def _choose_tile(batch, tile_b):
    """Pick a batch tile: multiple of 8 (f32 sublane), capped so that when the batch is
    large enough the grid has >= 2 steps (v7x megacore sharding)."""
    b_min = _round_up(max(batch, 1), 8)
    tile = _round_up(min(tile_b, b_min), 8)
    if b_min >= 16:
        tile = min(tile, _round_up((b_min + 1) // 2, 8))
    return tile


def _make_kernel(n_layers, n_actions, f_in, out_w):
    """Fused actor+critic forward over one batch tile.

    x_ref : (TILE_B, f_in)  f32, bias-1 lane at column F
    w_ref : (n_layers, w_pad, w_pad)  packed block-diagonal weights (+biases) in f32 or bf16
    out_ref: (TILE_B, out_w) f32; lanes [0:A] = policy, lane A = value
    """

    def kernel(x_ref, w_ref, out_ref):
        w_dtype = w_ref.dtype
        h = x_ref[...]                                   # f32
        for i in range(n_layers):                        # static unroll, one MXU pass / depth
            w_i = w_ref[i]                               # (w_pad, w_pad) load
            if i == 0:
                w_i = w_i[:f_in, :]                      # static tile-aligned slice (free view)
            lhs = h.astype(w_dtype) if w_dtype != jnp.float32 else h
            h = jnp.dot(lhs, w_i, preferred_element_type=jnp.float32)
            if i < n_layers - 1:
                h = jnp.maximum(h, 0.0)                  # ReLU; constant-1 lane survives

        # Only the first out_w lanes are meaningful: [0:A] actor logits, [A] critic value.
        h = h[:, :out_w]
        lane = jax.lax.broadcasted_iota(jnp.int32, h.shape, 1)
        logits = jnp.where(lane < n_actions, h, -jnp.inf)
        m = jnp.max(logits, axis=1, keepdims=True)
        e = jnp.exp(logits - m)                          # exp(-inf) = 0 on masked lanes
        denom = jnp.sum(e, axis=1, keepdims=True)
        probs = e / denom                                # exact division: rows sum to 1
        out_ref[...] = jnp.where(lane == n_actions, h, probs)

    return kernel


def pack_params(actor_params, critic_params, layer_sizes, dtype=jnp.float32):
    """Pack both MLPs into one (n_layers, W, W) block-diagonal weight slab.

    Hidden-state lane layout between layers i and i+1 (h = layer_sizes[i+1]):
      lanes [0:h]   actor hidden
      lanes [h:2h]  critic hidden
      lane  [2h]    constant 1.0 (feeds the next layer's biases)
    The last packed layer maps to lanes [0:A] (actor logits) and lane A (critic value).
    """
    n = len(layer_sizes) - 1
    widths = [layer_sizes[0] + 1]
    widths += [2 * layer_sizes[i] + 1 for i in range(1, n)]
    widths.append(layer_sizes[-1] + 1)
    w_pad = _round_up(max(widths + [128]), 128)          # keep 128-aligned (exact v5e MXU fit)

    slab = jnp.zeros((n, w_pad, w_pad), jnp.float32)
    for i in range(n):
        wa = actor_params[2 * i].astype(jnp.float32)
        ba = actor_params[2 * i + 1].reshape(-1).astype(jnp.float32)
        wc = critic_params[2 * i].astype(jnp.float32)
        bc = critic_params[2 * i + 1].reshape(-1).astype(jnp.float32)
        d_in, d_out_a = wa.shape
        d_out_c = wc.shape[1]
        first, last = (i == 0), (i == n - 1)
        c_row0 = 0 if first else d_in                    # layer 0: actor & critic both read x
        bias_row = d_in if first else 2 * d_in           # row fed by the constant-1 lane

        layer = jnp.zeros((w_pad, w_pad), jnp.float32)
        layer = layer.at[0:d_in, 0:d_out_a].set(wa)
        layer = layer.at[c_row0:c_row0 + d_in, d_out_a:d_out_a + d_out_c].set(wc)
        layer = layer.at[bias_row, 0:d_out_a].set(ba)
        layer = layer.at[bias_row, d_out_a:d_out_a + d_out_c].set(bc)
        if not last:
            layer = layer.at[bias_row, d_out_a + d_out_c].set(1.0)   # carry the 1 forward
        slab = slab.at[i].set(layer)
    return slab.astype(dtype)


def actor_critic_forward(x, packed_w, n_actions, tile_b=512):
    """Fused Pallas forward. Returns (policy [B, A], value [B, 1])."""
    B, F = x.shape
    n_layers, w_pad, _ = packed_w.shape

    # Decouple input/output slab widths from w_pad (cuts HBM traffic when w_pad > 128).
    f_in = min(_round_up(F + 1, 128), w_pad)
    out_w = min(_round_up(n_actions + 1, 128), w_pad)

    tile_b = _choose_tile(B, tile_b)
    b_pad = _round_up(B, tile_b)

    # Bias-augmented, lane-dense input slab built in one concat + one pad (single HBM pass).
    x_aug = jnp.concatenate(
        [x.astype(jnp.float32), jnp.ones((B, 1), jnp.float32)], axis=1)
    x_slab = jnp.pad(x_aug, ((0, b_pad - B), (0, f_in - (F + 1))))

    cost = pl.CostEstimate(
        flops=2 * n_layers * b_pad * w_pad * w_pad,
        transcendentals=b_pad * out_w,
        bytes_accessed=(b_pad * f_in * 4 + b_pad * out_w * 4
                        + packed_w.size * packed_w.dtype.itemsize))

    out = pl.pallas_call(
        _make_kernel(n_layers, n_actions, f_in, out_w),
        out_shape=jax.ShapeDtypeStruct((b_pad, out_w), jnp.float32),
        grid_spec=pltpu.PrefetchScalarGridSpec(
            num_scalar_prefetch=0,
            grid=(b_pad // tile_b,),
            in_specs=[
                pl.BlockSpec((tile_b, f_in), lambda i: (i, 0)),
                # Constant index_map: the weight slab is DMA'd once, resident across steps.
                pl.BlockSpec((n_layers, w_pad, w_pad), lambda i: (0, 0, 0)),
            ],
            out_specs=pl.BlockSpec((tile_b, out_w), lambda i: (i, 0)),
        ),
        compiler_params=pltpu.CompilerParams(
            dimension_semantics=("parallel",)),
        cost_estimate=cost,
    )(x_slab, packed_w)

    policy = out[:B, :n_actions]
    value = out[:B, n_actions:n_actions + 1]
    return policy, value


def init_params(key, layer_sizes):
    """Deterministic parameter init (shapes mirror ActorCriticNet.__init__),
    weights stored as (in_features, out_features) so forward is x @ W + b."""
    assert len(layer_sizes) > 1
    actor_params, critic_params = [], []
    n = len(layer_sizes) - 1
    for idx in range(n):
        d_in = layer_sizes[idx]
        d_out_actor = layer_sizes[idx + 1]
        d_out_critic = 1 if idx == n - 1 else layer_sizes[idx + 1]

        key, ka_w, ka_b, kc_w, kc_b = jax.random.split(key, 5)
        scale = 1.0 / jnp.sqrt(jnp.float32(d_in))
        actor_params.append(
            jax.random.uniform(ka_w, (d_in, d_out_actor), jnp.float32, -scale, scale))
        actor_params.append(
            jax.random.uniform(ka_b, (1, d_out_actor), jnp.float32, -scale, scale))
        critic_params.append(
            jax.random.uniform(kc_w, (d_in, d_out_critic), jnp.float32, -scale, scale))
        critic_params.append(
            jax.random.uniform(kc_b, (1, d_out_critic), jnp.float32, -scale, scale))
    return actor_params, critic_params


def reference_forward(x, actor_params, critic_params):
    """Pure-JAX reference mirroring the PyTorch module semantics."""
    n = len(actor_params) // 2
    h = x
    for i in range(n):
        h = h @ actor_params[2 * i] + actor_params[2 * i + 1]
        if i < n - 1:
            h = jnp.maximum(h, 0.0)
    policy = jax.nn.softmax(h, axis=1)
    h = x
    for i in range(n):
        h = h @ critic_params[2 * i] + critic_params[2 * i + 1]
        if i < n - 1:
            h = jnp.maximum(h, 0.0)
    return policy, h


if __name__ == "__main__":
    # layer_sizes = [obs_dim, hidden, n_actions]
    layer_sizes = [16, 32, 8]
    batch = 2

    key = jax.random.PRNGKey(0)
    key, kx, kp = jax.random.split(key, 3)
    x = jax.random.normal(kx, (batch, layer_sizes[0]), jnp.float32)
    actor_params, critic_params = init_params(kp, layer_sizes)
    ref_policy, ref_value = reference_forward(x, actor_params, critic_params)

    fwd = jax.jit(actor_critic_forward, static_argnames=("n_actions", "tile_b"))

    # --- f32 weight path: strict check against the PyTorch-semantics reference. ---
    packed_f32 = pack_params(actor_params, critic_params, layer_sizes, jnp.float32)
    policy, value = fwd(x, packed_f32, n_actions=layer_sizes[-1])
    jax.block_until_ready((policy, value))
    assert policy.shape == (batch, layer_sizes[-1])
    assert value.shape == (batch, 1)
    assert jnp.allclose(policy, ref_policy, atol=1e-5, rtol=1e-5)
    assert jnp.allclose(value, ref_value, atol=1e-5, rtol=1e-5)
    assert jnp.allclose(jnp.sum(policy, axis=1), 1.0, atol=1e-5)

    # --- bf16 weight path (v6e/v7x MXU fast path, f32 accumulation): looser tolerance. ---
    packed_bf16 = pack_params(actor_params, critic_params, layer_sizes, jnp.bfloat16)
    policy_bf, value_bf = fwd(x, packed_bf16, n_actions=layer_sizes[-1])
    jax.block_until_ready((policy_bf, value_bf))
    assert jnp.allclose(policy_bf, ref_policy, atol=2e-2, rtol=2e-2)
    assert jnp.allclose(value_bf, ref_value, atol=2e-2, rtol=2e-2)
    assert jnp.allclose(jnp.sum(policy_bf, axis=1), 1.0, atol=1e-5)

    print("KERNEL_OK")
</pallas_src>

<mosaic_0001>
module attributes {stable_mosaic.version = 11 : i64} {
  func.func @kernel(%arg0: i32, %arg1: memref<8x128xf32, #tpu.memory_space<vmem>>, %arg2: memref<2x128x128xf32, #tpu.memory_space<vmem>>, %arg3: memref<8x128xf32, #tpu.memory_space<vmem>>) attributes {dimension_semantics = [#tpu.dimension_semantics<parallel>], iteration_bounds = array<i64: 1>, scalar_prefetch = 0 : i64, scratch_operands = 0 : i64, tpu.core_type = #tpu.core_type<tc>, window_params = [{transform_indices = @transform_0, window_bounds = array<i64: 8, 128>}, {pipeline_mode = #tpu.pipeline_mode<synchronous>, transform_indices = @transform_1, window_bounds = array<i64: 2, 128, 128>}, {transform_indices = @transform_2, window_bounds = array<i64: 8, 128>}]} {
    %c0 = arith.constant 0 : index
    %c0_0 = arith.constant 0 : index
    %0 = vector.load %arg1[%c0, %c0_0] : memref<8x128xf32, #tpu.memory_space<vmem>>, vector<8x128xf32>
    %c0_1 = arith.constant 0 : index
    %c0_2 = arith.constant 0 : index
    %c0_3 = arith.constant 0 : index
    %1 = vector.load %arg2[%c0_1, %c0_2, %c0_3] : memref<2x128x128xf32, #tpu.memory_space<vmem>>, vector<1x128x128xf32>
    %2 = vector.shape_cast %1 : vector<1x128x128xf32> to vector<128x128xf32>
    %cst = arith.constant dense<0.000000e+00> : vector<8x128xf32>
    %3 = tpu.matmul %0, %2, %cst {dimension_numbers = #tpu.dot_dimension_numbers<[1], [0], [0], [1], [0, 0, 1, 1], [], []>} : vector<8x128xf32>, vector<128x128xf32>, vector<8x128xf32> -> vector<8x128xf32>
    %cst_4 = arith.constant 0.000000e+00 : f32
    %4 = vector.broadcast %cst_4 : f32 to vector<8x128xf32>
    %5 = arith.maximumf %3, %4 : vector<8x128xf32>
    %c1 = arith.constant 1 : index
    %c0_5 = arith.constant 0 : index
    %c0_6 = arith.constant 0 : index
    %6 = vector.load %arg2[%c1, %c0_5, %c0_6] : memref<2x128x128xf32, #tpu.memory_space<vmem>>, vector<1x128x128xf32>
    %7 = vector.shape_cast %6 : vector<1x128x128xf32> to vector<128x128xf32>
    %cst_7 = arith.constant dense<0.000000e+00> : vector<8x128xf32>
    %8 = tpu.matmul %5, %7, %cst_7 {dimension_numbers = #tpu.dot_dimension_numbers<[1], [0], [0], [1], [0, 0, 1, 1], [], []>} : vector<8x128xf32>, vector<128x128xf32>, vector<8x128xf32> -> vector<8x128xf32>
    %9 = tpu.iota {dimensions = array<i32: 1>} : vector<8x128xi32>
    %c8_i32 = arith.constant 8 : i32
    %10 = vector.broadcast %c8_i32 : i32 to vector<8x128xi32>
    %11 = arith.cmpi slt, %9, %10 : vector<8x128xi32>
    %cst_8 = arith.constant 0xFF800000 : f32
    %12 = vector.broadcast %cst_8 : f32 to vector<8x128xf32>
    %13 = arith.select %11, %8, %12 : vector<8x128xi1>, vector<8x128xf32>
    %cst_9 = arith.constant dense<0xFF800000> : vector<8xf32>
    %14 = vector.multi_reduction <maximumf>, %13, %cst_9 [1] : vector<8x128xf32> to vector<8xf32>
    %15 = vector.shape_cast %14 : vector<8xf32> to vector<8x1xf32>
    %16 = vector.broadcast %15 : vector<8x1xf32> to vector<8x128xf32>
    %17 = arith.subf %13, %16 : vector<8x128xf32>
    %18 = math.exp %17 : vector<8x128xf32>
    %cst_10 = arith.constant dense<0.000000e+00> : vector<8xf32>
    %19 = vector.multi_reduction <add>, %18, %cst_10 [1] : vector<8x128xf32> to vector<8xf32>
    %20 = vector.shape_cast %19 : vector<8xf32> to vector<8x1xf32>
    %21 = vector.broadcast %20 : vector<8x1xf32> to vector<8x128xf32>
    %22 = arith.divf %18, %21 : vector<8x128xf32>
    %c8_i32_11 = arith.constant 8 : i32
    %23 = vector.broadcast %c8_i32_11 : i32 to vector<8x128xi32>
    %24 = arith.cmpi eq, %9, %23 : vector<8x128xi32>
    %25 = arith.select %24, %8, %22 : vector<8x128xi1>, vector<8x128xf32>
    %c0_12 = arith.constant 0 : index
    %c0_13 = arith.constant 0 : index
    %26 = vector.load %arg3[%c0_12, %c0_13] : memref<8x128xf32, #tpu.memory_space<vmem>>, vector<8x128xf32>
    tpu.vector_store %arg3[%c0_12, %c0_13], %25 {strides = array<i32>} : memref<8x128xf32, #tpu.memory_space<vmem>>, vector<8x128xf32>,
    return
  }
  func.func @transform_0(%arg0: i32) -> (i32, i32) {
    %c0_i32 = arith.constant 0 : i32
    %c0_i32_0 = arith.constant 0 : i32
    return %arg0, %c0_i32 : i32, i32
  }
  func.func @transform_1(%arg0: i32) -> (i32, i32, i32) {
    %c0_i32 = arith.constant 0 : i32
    %c0_i32_0 = arith.constant 0 : i32
    %c0_i32_1 = arith.constant 0 : i32
    %c0_i32_2 = arith.constant 0 : i32
    return %c0_i32, %c0_i32_0, %c0_i32_1 : i32, i32, i32
  }
  func.func @transform_2(%arg0: i32) -> (i32, i32) {
    %c0_i32 = arith.constant 0 : i32
    %c0_i32_0 = arith.constant 0 : i32
    return %arg0, %c0_i32 : i32, i32
  }
}

</mosaic_0001>

<bundles_post_ra>
// kernel: actor_critic_forward.1
= control target key start
LH: loop header
LB: loop body
LE: loop exit
PB: predicated region body
PF: predicated region fallthrough
CT: control target
= control target key end

     0   :  { %7 = vsyncpa [#allocation3], 0  ;;  %s169_s12 = smov [#allocation2]   ;;  %s170_s14 = smov 128   ;;  %s196_s0 = inlined_call_operand.vmem [shape: f32[8,128], index: 0, kind: input, shape index: {}]   ;;  %s197_s1 = inlined_call_operand.hbm [shape: f32[2,128,128], index: 1, kind: input, shape index: {}]   ;;  %s198_s2 = inlined_call_operand.vmem [shape: f32[8,128], index: 2, kind: output, shape index: {}]  }
   0x1   :  { %s14_s11 = sshll.u32 %s197_s1, 4  ;;  %s16_s13 = sshll.u32 %s169_s12, 4  ;;  %s15_s11 = int_to_ptr.hbm [resolvable:$true] %s14_s11  ;;  %s17_s13 = int_to_ptr.vmem [resolvable:$true] %s16_s13 }
   0x2   :  { %s171_s15 = smov 8  }
   0x3   :  { %22 = dma.hbm_to_vmem [thread:$0]  %s15_s11, 4096, %s17_s13, [#allocation3], %s170_s14, %s170_s14, %s171_s15  }
   0x4   :  { %167 = dma.done.wait [#allocation3], 4096  }
   0x5   :  { %168 = vsyncadd [#allocation3], 4294963200  ;;  %v43_v0 = vld [vmem:[#allocation2 + $0x78] sm:$0xff]  ;;  %v42_v1 = vld [vmem:[#allocation2 + $0x70] sm:$0xff]  ;;  %v102_v35 = vlaneseq }
   0x6   :  { %44 = vmatpush.msra.mxu0 %v43_v0  ;;  %v41_v2 = vld [vmem:[#allocation2 + $0x68] sm:$0xff]  ;;  %v40_v3 = vld [vmem:[#allocation2 + $0x60] sm:$0xff]  ;;  %v81_v4 = vld [vmem:[#allocation2 + $0xf8] sm:$0xff] }
   0x7   :  { %v39_v5 = vld [vmem:[#allocation2 + $0x58] sm:$0xff]  ;;  %82 = vmatpush.msra.mxu1 %v81_v4  ;;  %v80_v6 = vld [vmem:[#allocation2 + $0xf0] sm:$0xff]  ;;  %v79_v7 = vld [vmem:[#allocation2 + $0xe8] sm:$0xff]  ;;  %v103_v36 = vand.u32 127, %v102_v35 }
   0x8   :  { %45 = vmatpush.msra.mxu0 %v42_v1  ;;  %v38_v8 = vld [vmem:[#allocation2 + $0x50] sm:$0xff]  ;;  %v78_v9 = vld [vmem:[#allocation2 + $0xe0] sm:$0xff]  ;;  %v37_v10 = vld [vmem:[#allocation2 + $0x48] sm:$0xff] }
   0x9   :  { %83 = vmatpush.msra.mxu1 %v80_v6  ;;  %v77_v11 = vld [vmem:[#allocation2 + $0xd8] sm:$0xff]  ;;  %v36_v12 = vld [vmem:[#allocation2 + $0x40] sm:$0xff]  ;;  %v76_v13 = vld [vmem:[#allocation2 + $0xd0] sm:$0xff]  ;;  %vm104_vm0 = vcmp.lt.s32.totalorder %v103_v36, 8  ;;  %vm128_vm5 = vcmp.eq.s32.totalorder %v103_v36, 8 }
   0xa   :  { %46 = vmatpush.msra.mxu0 %v41_v2  ;;  %v35_v14 = vld [vmem:[#allocation2 + $0x38] sm:$0xff]  ;;  %v75_v15 = vld [vmem:[#allocation2 + $0xc8] sm:$0xff]  ;;  %v34_v16 = vld [vmem:[#allocation2 + $0x30] sm:$0xff] }
   0xb   :  { %84 = vmatpush.msra.mxu1 %v79_v7  ;;  %v74_v17 = vld [vmem:[#allocation2 + $0xc0] sm:$0xff]  ;;  %v33_v18 = vld [vmem:[#allocation2 + $0x28] sm:$0xff]  ;;  %v73_v19 = vld [vmem:[#allocation2 + $0xb8] sm:$0xff] }
   0xc   :  { %47 = vmatpush.msra.mxu0 %v40_v3  ;;  %v32_v20 = vld [vmem:[#allocation2 + $0x20] sm:$0xff]  ;;  %v72_v21 = vld [vmem:[#allocation2 + $0xb0] sm:$0xff]  ;;  %v31_v22 = vld [vmem:[#allocation2 + $0x18] sm:$0xff] }
   0xd   :  { %85 = vmatpush.msra.mxu1 %v78_v9  ;;  %v71_v23 = vld [vmem:[#allocation2 + $0xa8] sm:$0xff]  ;;  %v30_v24 = vld [vmem:[#allocation2 + $0x10] sm:$0xff]  ;;  %v70_v25 = vld [vmem:[#allocation2 + $0xa0] sm:$0xff] }
   0xe   :  { %48 = vmatpush.msra.mxu0 %v39_v5  ;;  %v29_v26 = vld [vmem:[#allocation2 + $0x8] sm:$0xff]  ;;  %v69_v27 = vld [vmem:[#allocation2 + $0x98] sm:$0xff]  ;;  %v28_v28 = vld [vmem:[#allocation2] sm:$0xff] }
   0xf   :  { %86 = vmatpush.msra.mxu1 %v77_v11  ;;  %v27_v29 = vld [vmem:[%s196_s0] sm:$0xff]  ;;  %v68_v30 = vld [vmem:[#allocation2 + $0x90] sm:$0xff]  ;;  %v67_v31 = vld [vmem:[#allocation2 + $0x88] sm:$0xff] }
  0x10   :  { %49 = vmatpush.msra.mxu0 %v38_v8  ;;  %v66_v32 = vld [vmem:[#allocation2 + $0x80] sm:$0xff] }
  0x11   :  { %87 = vmatpush.msra.mxu1 %v76_v13 }
  0x12   :  { %50 = vmatpush.msra.mxu0 %v37_v10 }
  0x13   :  { %88 = vmatpush.msra.mxu1 %v75_v15 }
  0x14   :  { %51 = vmatpush.msra.mxu0 %v36_v12 }
  0x15   :  { %89 = vmatpush.msra.mxu1 %v74_v17 }
  0x16   :  { %52 = vmatpush.msra.mxu0 %v35_v14 }
  0x17   :  { %90 = vmatpush.msra.mxu1 %v73_v19 }
  0x18   :  { %53 = vmatpush.msra.mxu0 %v34_v16 }
  0x19   :  { %91 = vmatpush.msra.mxu1 %v72_v21 }
  0x1a   :  { %54 = vmatpush.msra.mxu0 %v33_v18 }
  0x1b   :  { %92 = vmatpush.msra.mxu1 %v71_v23 }
  0x1c   :  { %55 = vmatpush.msra.mxu0 %v32_v20 }
  0x1d   :  { %93 = vmatpush.msra.mxu1 %v70_v25 }
  0x1e   :  { %56 = vmatpush.msra.mxu0 %v31_v22 }
  0x1f   :  { %94 = vmatpush.msra.mxu1 %v69_v27 }
  0x20   :  { %57 = vmatpush.msra.mxu0 %v30_v24 }
  0x21   :  { %95 = vmatpush.msra.mxu1 %v68_v30 }
  0x22   :  { %58 = vmatpush.msra.mxu0 %v29_v26 }
  0x23   :  { %96 = vmatpush.msra.mxu1 %v67_v31 }
  0x24   :  { %59 = vmatpush.msra.mxu0 %v28_v28 }
  0x25   :  { %60 = vmatmul.f32.vlgmr.msra.gmra.mxu0 %v27_v29  ;;  %97 = vmatpush.msra.mxu1 %v66_v32 }
  0xa2   :  { %v61_v33 = vpop.f32.mrf.mxu0 }
  0xa3   :  { %v64_v34 = vmax.f32 %v61_v33, 0.0 }
  0xa5   :  { %98 = vmatmul.f32.vlgmr.msra.gmra.mxu1 %v64_v34 }
 0x122   :  { %v99_v37 = vpop.f32.mrf.mxu1 }
 0x123   :  { %v105_v38 = vsel %vm104_vm0, %v99_v37, -inf }
 0x124   :  { %106 = vmax.xlane.f32.xlu0 %v105_v38 }
 0x197   :  { %v107_v39 = vpop.xlane.xlu0 %106 }
 0x198   :  { %v108_v40 = vsub.f32 %v105_v38, %v107_v39 }
 0x19a   :  { %v109_v41 = vmul.f32 1.442695, %v108_v40 }
 0x19c   :  { %139 = vpow2.f32 %v109_v41 }
 0x1a2   :  { %v140_v42 = vpop.eup %139 }
 0x1a3   :  { %111 = vadd.xlane.f32.xlu0 %v140_v42 }
 0x216   :  { %v112_v43 = vpop.xlane.xlu0 %111 }
 0x217   :  { %141 = vrcp.f32 %v112_v43  ;;  %v124_v47 = vand.u32 2147483648, %v112_v43  ;;  %v122_v49 = vand.u32 2147483647, %v112_v43  ;;  %vm118_vm2 = vweird.f32 %v112_v43 }
 0x219   :  { %v125_v51 = vor.u32 1.1754944e-38, %v124_v47  ;;  %vm123_vm4 = vcmp.eq.f32.partialorder %v122_v49, 8.507059e+37 }
 0x21d   :  { %v142_v44 = vpop.eup %141 }
 0x21e   :  { %v114_v45 = vmul.f32 %v142_v44, %v112_v43  ;;  %vm119_vm1 = vweird.f32 %v142_v44 }
 0x21f   :  { %vm120_vm3 = vmor %vm118_vm2, %vm119_vm1 }
 0x220   :  { %v115_v46 = vsub.f32 1.0, %v114_v45 }
 0x222   :  { %v116_v48 = vmul.f32 %v142_v44, %v115_v46 }
 0x224   :  { %v117_v50 = vadd.f32 %v142_v44, %v116_v48 }
 0x226   :  { %v121_v52 = vsel %vm120_vm3, %v142_v44, %v117_v50 }
 0x227   :  { %v126_v53 = vsel %vm123_vm4, %v125_v51, %v121_v52 }
 0x228   :  { %v127_v54 = vmul.f32 %v140_v42, %v126_v53 }
 0x22a   :  { %v129_v55 = vsel %vm128_vm5, %v99_v37, %v127_v54 }
 0x22b   :  { %130 = vst [vmem:[%s198_s2] sm:$0xff] %v129_v55 }
 0x22c   :  { %135 = vsyncpa [#allocation3], 1 }

</bundles_post_ra>
